<compile_context>
chip_gen: v5e
topology: v5e:2x2
jax: 0.10.0
libtpu: 0.0.40
codegen_flags: <defaults>
</compile_context>

<pallas_src>
import math

import numpy as np

import jax
import jax.numpy as jnp
from jax import lax
from jax.experimental import pallas as pl
from jax.experimental.pallas import tpu as pltpu


_VMEM_LIMIT_BYTES = 48 * 1024 * 1024   # > v5e's 16 MiB scoped default, < v7x physical
_MIN_SPLIT_N = 1024                     # batches >= this get >= 2 grid steps (v7x 2 TCs)


# ---------------------------------------------------------------------------
# Kernels (transposed, lane-dense compute: activations are [features, tile_n])
# ---------------------------------------------------------------------------

def _mlp_math_t(x, w1, b1, w2, b2, w3, b3, w4, b4):
    """Fused forward in transposed space.

    x arrives row-major [tile_n, D_in]; the first dot contracts both operands'
    last dim (W1 @ x^T on the MXU) so the big tile is never explicitly
    transposed.  Dots run in the weights' dtype (f32 or bf16) and accumulate in
    f32; bias add / ReLU / log_softmax stay f32.  Returned activations are
    [features, tile_n] -> lane-dense stores.
    """
    cd = w1.dtype
    h1 = jnp.maximum(
        lax.dot_general(w1, x, (((1,), (1,)), ((), ())),
                        preferred_element_type=jnp.float32) + b1, 0.0)
    h2 = jnp.maximum(
        jnp.dot(w2, h1.astype(cd), preferred_element_type=jnp.float32) + b2, 0.0)
    h3 = jnp.maximum(
        jnp.dot(w3, h2.astype(cd), preferred_element_type=jnp.float32) + b3, 0.0)
    logits = jnp.dot(w4, h3.astype(cd), preferred_element_type=jnp.float32) + b4
    # log_softmax over the feature (sublane) axis.
    m = jnp.max(logits, axis=0, keepdims=True)
    lse = jnp.log(jnp.sum(jnp.exp(logits - m), axis=0, keepdims=True)) + m
    return h1, h2, h3, logits - lse


def _plnn_train_kernel(x_ref,
                       w1_ref, b1_ref, w2_ref, b2_ref,
                       w3_ref, b3_ref, w4_ref, b4_ref,
                       out_ref):
    """Training path: only the log-probs go back to HBM (no hidden-state writes)."""
    _, _, _, logp = _mlp_math_t(
        x_ref[...],
        w1_ref[...], b1_ref[...], w2_ref[...], b2_ref[...],
        w3_ref[...], b3_ref[...], w4_ref[...], b4_ref[...])
    out_ref[...] = logp


def _plnn_eval_kernel(x_ref,
                      w1_ref, b1_ref, w2_ref, b2_ref,
                      w3_ref, b3_ref, w4_ref, b4_ref,
                      out_ref, m1_ref, m2_ref, m3_ref):
    """Eval path: also emit int8 activation masks (h > 0) for active-state extraction."""
    h1, h2, h3, logp = _mlp_math_t(
        x_ref[...],
        w1_ref[...], b1_ref[...], w2_ref[...], b2_ref[...],
        w3_ref[...], b3_ref[...], w4_ref[...], b4_ref[...])
    out_ref[...] = logp
    m1_ref[...] = (h1 > 0.0).astype(jnp.int8)
    m2_ref[...] = (h2 > 0.0).astype(jnp.int8)
    m3_ref[...] = (h3 > 0.0).astype(jnp.int8)


# ---------------------------------------------------------------------------
# Wrappers
# ---------------------------------------------------------------------------

def _round_up(n, m):
    return ((n + m - 1) // m) * m


def _dims(params):
    H1, D_in = params["w1"].shape
    H2 = params["w2"].shape[0]
    H3 = params["w3"].shape[0]
    D_out = params["w4"].shape[0]
    return D_in, H1, H2, H3, D_out


def _const_spec(shape):
    # Full-array block, same index every grid step -> stays resident in VMEM.
    return pl.BlockSpec(shape, lambda i: (0, 0))


def _row_spec(tile_n, d):
    # Input x: rows tiled along the batch axis.
    return pl.BlockSpec((tile_n, d), lambda i: (i, 0))


def _col_spec(rows, tile_n):
    # Transposed outputs: batch tile on the lane axis -> lane-dense stores.
    return pl.BlockSpec((rows, tile_n), lambda i: (0, i))


def _weight_specs(dims):
    D_in, H1, H2, H3, D_out = dims
    return [
        _const_spec((H1, D_in)), _const_spec((H1, 1)),
        _const_spec((H2, H1)), _const_spec((H2, 1)),
        _const_spec((H3, H2)), _const_spec((H3, 1)),
        _const_spec((D_out, H3)), _const_spec((D_out, 1)),
    ]


def _maybe_cast(x, params, compute_dtype):
    """Optionally cast x + weights (not biases) to a narrower MXU dtype (e.g. bf16)."""
    if compute_dtype is None or jnp.dtype(compute_dtype) == x.dtype:
        return x, params
    cast = dict(params)
    for k in ("w1", "w2", "w3", "w4"):
        cast[k] = params[k].astype(compute_dtype)
    return x.astype(compute_dtype), cast


def _prepare_x(x, max_tile_n):
    """Pick a batch tile and pad N.

    Small batches run as a single grid step (block == full array dims, so no
    (8,128) divisibility needed).  Larger batches use tiles that are multiples
    of 128 (lane-dense transposed outputs) and keep >= 2 grid steps so the v7x
    megacore can shard the batch axis.
    """
    n = x.shape[0]
    if n <= max_tile_n and n < _MIN_SPLIT_N:
        n_pad = _round_up(n, 8)
        if n_pad != n:
            x = jnp.pad(x, ((0, n_pad - n), (0, 0)))
        return x, n_pad, n
    max_tile = max(128, (max_tile_n // 128) * 128)
    tile = min(max_tile, _round_up(n, 128))
    if n >= _MIN_SPLIT_N:
        tile = min(tile, _round_up(-(-n // 2), 128))   # >= 2 grid steps
    n_pad = _round_up(n, tile)
    if n_pad != n:
        x = jnp.pad(x, ((0, n_pad - n), (0, 0)))
    return x, tile, n


def _cost_estimate(n_rows, x_itemsize, dims, extra_out_bytes, params):
    D_in, H1, H2, H3, D_out = dims
    flops = 2 * n_rows * (D_in * H1 + H1 * H2 + H2 * H3 + H3 * D_out)
    transcendentals = n_rows * (D_out + 1)            # exp per logit + log per sample
    pbytes = sum(int(v.size) * v.dtype.itemsize for v in params.values())
    bytes_accessed = (n_rows * (D_in * x_itemsize + D_out * 4)
                      + extra_out_bytes + pbytes)
    return pl.CostEstimate(flops=flops, transcendentals=transcendentals,
                           bytes_accessed=bytes_accessed)


def plnn_forward_train(x, params, *, max_tile_n=8192, compute_dtype=None):
    """Training-stage forward: returns log_softmax(fc4(relu(...))) of shape [N, D_out]."""
    dims = _dims(params)
    D_in, H1, H2, H3, D_out = dims
    x, cparams = _maybe_cast(x, params, compute_dtype)
    x_pad, tile_n, n = _prepare_x(x, max_tile_n)
    n_pad = x_pad.shape[0]
    grid = (n_pad // tile_n,)

    out_t = pl.pallas_call(
        _plnn_train_kernel,
        out_shape=jax.ShapeDtypeStruct((D_out, n_pad), jnp.float32),
        grid=grid,
        in_specs=[_row_spec(tile_n, D_in)] + _weight_specs(dims),
        out_specs=_col_spec(D_out, tile_n),
        compiler_params=pltpu.CompilerParams(
            dimension_semantics=("parallel",),
            vmem_limit_bytes=_VMEM_LIMIT_BYTES),
        cost_estimate=_cost_estimate(n_pad, x_pad.dtype.itemsize, dims, 0, cparams),
    )(x_pad,
      cparams["w1"], cparams["b1"], cparams["w2"], cparams["b2"],
      cparams["w3"], cparams["b3"], cparams["w4"], cparams["b4"])
    # Layout plumbing back to the PyTorch-convention [N, D_out] output.
    return out_t[:, :n].T


def plnn_forward_eval(x, params, *, max_tile_n=8192, compute_dtype=None):
    """Eval-stage forward: returns (states, log_probs).

    states is a dict of int8 activation masks of shape [N, H_k] (1 where the
    post-ReLU hidden is > 0), which is exactly what the reference active_state
    consumes.
    """
    dims = _dims(params)
    D_in, H1, H2, H3, D_out = dims
    x, cparams = _maybe_cast(x, params, compute_dtype)
    x_pad, tile_n, n = _prepare_x(x, max_tile_n)
    n_pad = x_pad.shape[0]
    grid = (n_pad // tile_n,)

    out_shapes = (
        jax.ShapeDtypeStruct((D_out, n_pad), jnp.float32),
        jax.ShapeDtypeStruct((H1, n_pad), jnp.int8),
        jax.ShapeDtypeStruct((H2, n_pad), jnp.int8),
        jax.ShapeDtypeStruct((H3, n_pad), jnp.int8),
    )
    out_specs = (
        _col_spec(D_out, tile_n),
        _col_spec(H1, tile_n),
        _col_spec(H2, tile_n),
        _col_spec(H3, tile_n),
    )
    extra_bytes = n_pad * (H1 + H2 + H3)   # int8 masks

    logp_t, m1, m2, m3 = pl.pallas_call(
        _plnn_eval_kernel,
        out_shape=out_shapes,
        grid=grid,
        in_specs=[_row_spec(tile_n, D_in)] + _weight_specs(dims),
        out_specs=out_specs,
        compiler_params=pltpu.CompilerParams(
            dimension_semantics=("parallel",),
            vmem_limit_bytes=_VMEM_LIMIT_BYTES),
        cost_estimate=_cost_estimate(n_pad, x_pad.dtype.itemsize, dims,
                                     extra_bytes, cparams),
    )(x_pad,
      cparams["w1"], cparams["b1"], cparams["w2"], cparams["b2"],
      cparams["w3"], cparams["b3"], cparams["w4"], cparams["b4"])

    states = {
        "h1": m1[:, :n].T,
        "h2": m2[:, :n].T,
        "h3": m3[:, :n].T,
    }
    return states, logp_t[:, :n].T


def init_plnn_params(key, D_in, H1, H2, H3, D_out):
    """nn.Linear-style init U(-1/sqrt(fan_in), 1/sqrt(fan_in)).
    Weights stored (out, in) exactly like nn.Linear; biases as (out, 1)."""
    shapes = [(H1, D_in), (H2, H1), (H3, H2), (D_out, H3)]
    params = {}
    for i, (fout, fin) in enumerate(shapes, start=1):
        key, kw, kb = jax.random.split(key, 3)
        bound = 1.0 / math.sqrt(fin)
        params[f"w{i}"] = jax.random.uniform(
            kw, (fout, fin), jnp.float32, minval=-bound, maxval=bound)
        params[f"b{i}"] = jax.random.uniform(
            kb, (fout, 1), jnp.float32, minval=-bound, maxval=bound)
    return params


def active_state(h):
    """JAX/host equivalent of the reference active_state for a single-sample [1, H]
    array.  Works both on the kernel's int8 masks and on raw float hiddens."""
    h = np.asarray(jax.device_get(h)).reshape(h.shape[1])
    return [int(v) for v in (h > 0).astype(np.int32)]


def _reference_forward(x, params):
    """Pure-JAX reference for correctness checking ((out, in) weight layout)."""
    def lin(h, w, b):
        return h @ w.T + b.reshape(1, -1)
    h1 = jnp.maximum(lin(x, params["w1"], params["b1"]), 0.0)
    h2 = jnp.maximum(lin(h1, params["w2"], params["b2"]), 0.0)
    h3 = jnp.maximum(lin(h2, params["w3"], params["b3"]), 0.0)
    logits = lin(h3, params["w4"], params["b4"])
    return jax.nn.log_softmax(logits, axis=1), h1, h2, h3


if __name__ == "__main__":
    # Small shapes consistent with the MLP: D_in=32, H1=64, H2=64, H3=32, D_out=16.
    D_in, H1, H2, H3, D_out = 32, 64, 64, 32, 16

    key = jax.random.PRNGKey(0)
    key, kp, kx, kx2, kx3 = jax.random.split(key, 5)
    params = init_plnn_params(kp, D_in, H1, H2, H3, D_out)

    # --- 'train' stage: small batch, kernel returns only log-probs ---
    x_train = jax.random.normal(kx, (8, D_in), jnp.float32)
    out_train = jax.block_until_ready(plnn_forward_train(x_train, params))
    ref_out, _, _, _ = _reference_forward(x_train, params)
    assert out_train.shape == (8, D_out)
    assert bool(jnp.all(jnp.abs(jnp.sum(jnp.exp(out_train), axis=1) - 1.0) < 1e-4))
    assert bool(jnp.all(jnp.abs(out_train - ref_out) < 1e-4))

    # --- ragged batch (N not a multiple of 8): exercises the padding path ---
    x_ragged = jax.random.normal(kx2, (10, D_in), jnp.float32)
    out_ragged = jax.block_until_ready(plnn_forward_train(x_ragged, params))
    ref_ragged, _, _, _ = _reference_forward(x_ragged, params)
    assert out_ragged.shape == (10, D_out)
    assert bool(jnp.all(jnp.abs(out_ragged - ref_ragged) < 1e-4))

    # --- multi-step grid: 128-row lane-dense tiles, grid > 1, padded tail ---
    x_big = jax.random.normal(kx3, (300, D_in), jnp.float32)
    out_big = jax.block_until_ready(plnn_forward_train(x_big, params, max_tile_n=128))
    ref_big, _, _, _ = _reference_forward(x_big, params)
    assert out_big.shape == (300, D_out)
    assert bool(jnp.all(jnp.abs(out_big - ref_big) < 2e-4))

    # --- 'eval' stage: single sample, active states from int8 masks ---
    x_eval = x_train[:1]
    states_arr, out_eval = plnn_forward_eval(x_eval, params)
    out_eval = jax.block_until_ready(out_eval)
    states = {k: active_state(v) for k, v in states_arr.items()}
    ref_out_e, rh1, rh2, rh3 = _reference_forward(x_eval, params)
    assert bool(jnp.all(jnp.abs(out_eval - ref_out_e) < 1e-4))
    assert len(states["h1"]) == H1 and len(states["h2"]) == H2 and len(states["h3"]) == H3
    assert all(s in (0, 1) for s in states["h1"] + states["h2"] + states["h3"])
    assert states["h1"] == [int(v) for v in (rh1.reshape(-1) > 0).astype(jnp.int32).tolist()]
    assert states["h2"] == [int(v) for v in (rh2.reshape(-1) > 0).astype(jnp.int32).tolist()]
    assert states["h3"] == [int(v) for v in (rh3.reshape(-1) > 0).astype(jnp.int32).tolist()]

    # --- optional bf16 MXU path (halves x/weight HBM bytes); looser tolerance ---
    out_bf16 = jax.block_until_ready(
        plnn_forward_train(x_train, params, compute_dtype=jnp.bfloat16))
    assert out_bf16.shape == (8, D_out)
    assert bool(jnp.all(jnp.abs(out_bf16 - ref_out) < 0.1))

    print("KERNEL_OK")
</pallas_src>

<mosaic_0001>
module attributes {stable_mosaic.version = 11 : i64} {
  func.func @_plnn_train_kernel(%arg0: i32, %arg1: memref<8x32xf32, #tpu.memory_space<vmem>>, %arg2: memref<64x32xf32, #tpu.memory_space<vmem>>, %arg3: memref<64x1xf32, #tpu.memory_space<vmem>>, %arg4: memref<64x64xf32, #tpu.memory_space<vmem>>, %arg5: memref<64x1xf32, #tpu.memory_space<vmem>>, %arg6: memref<32x64xf32, #tpu.memory_space<vmem>>, %arg7: memref<32x1xf32, #tpu.memory_space<vmem>>, %arg8: memref<16x32xf32, #tpu.memory_space<vmem>>, %arg9: memref<16x1xf32, #tpu.memory_space<vmem>>, %arg10: memref<16x8xf32, #tpu.memory_space<vmem>>) attributes {dimension_semantics = [#tpu.dimension_semantics<parallel>], iteration_bounds = array<i64: 1>, scalar_prefetch = 0 : i64, scratch_operands = 0 : i64, tpu.core_type = #tpu.core_type<tc>, window_params = [{transform_indices = @transform_0, window_bounds = array<i64: 8, 32>}, {pipeline_mode = #tpu.pipeline_mode<synchronous>, transform_indices = @transform_1, window_bounds = array<i64: 64, 32>}, {pipeline_mode = #tpu.pipeline_mode<synchronous>, transform_indices = @transform_2, window_bounds = array<i64: 64, 1>}, {pipeline_mode = #tpu.pipeline_mode<synchronous>, transform_indices = @transform_3, window_bounds = array<i64: 64, 64>}, {pipeline_mode = #tpu.pipeline_mode<synchronous>, transform_indices = @transform_4, window_bounds = array<i64: 64, 1>}, {pipeline_mode = #tpu.pipeline_mode<synchronous>, transform_indices = @transform_5, window_bounds = array<i64: 32, 64>}, {pipeline_mode = #tpu.pipeline_mode<synchronous>, transform_indices = @transform_6, window_bounds = array<i64: 32, 1>}, {pipeline_mode = #tpu.pipeline_mode<synchronous>, transform_indices = @transform_7, window_bounds = array<i64: 16, 32>}, {pipeline_mode = #tpu.pipeline_mode<synchronous>, transform_indices = @transform_8, window_bounds = array<i64: 16, 1>}, {transform_indices = @transform_9, window_bounds = array<i64: 16, 8>}]} {
    %c0 = arith.constant 0 : index
    %c0_0 = arith.constant 0 : index
    %0 = vector.load %arg1[%c0, %c0_0] : memref<8x32xf32, #tpu.memory_space<vmem>>, vector<8x32xf32>
    %c0_1 = arith.constant 0 : index
    %c0_2 = arith.constant 0 : index
    %1 = vector.load %arg2[%c0_1, %c0_2] : memref<64x32xf32, #tpu.memory_space<vmem>>, vector<64x32xf32>
    %c0_3 = arith.constant 0 : index
    %c0_4 = arith.constant 0 : index
    %2 = vector.load %arg3[%c0_3, %c0_4] : memref<64x1xf32, #tpu.memory_space<vmem>>, vector<64x1xf32>
    %c0_5 = arith.constant 0 : index
    %c0_6 = arith.constant 0 : index
    %3 = vector.load %arg4[%c0_5, %c0_6] : memref<64x64xf32, #tpu.memory_space<vmem>>, vector<64x64xf32>
    %c0_7 = arith.constant 0 : index
    %c0_8 = arith.constant 0 : index
    %4 = vector.load %arg5[%c0_7, %c0_8] : memref<64x1xf32, #tpu.memory_space<vmem>>, vector<64x1xf32>
    %c0_9 = arith.constant 0 : index
    %c0_10 = arith.constant 0 : index
    %5 = vector.load %arg6[%c0_9, %c0_10] : memref<32x64xf32, #tpu.memory_space<vmem>>, vector<32x64xf32>
    %c0_11 = arith.constant 0 : index
    %c0_12 = arith.constant 0 : index
    %6 = vector.load %arg7[%c0_11, %c0_12] : memref<32x1xf32, #tpu.memory_space<vmem>>, vector<32x1xf32>
    %c0_13 = arith.constant 0 : index
    %c0_14 = arith.constant 0 : index
    %7 = vector.load %arg8[%c0_13, %c0_14] : memref<16x32xf32, #tpu.memory_space<vmem>>, vector<16x32xf32>
    %c0_15 = arith.constant 0 : index
    %c0_16 = arith.constant 0 : index
    %8 = vector.load %arg9[%c0_15, %c0_16] : memref<16x1xf32, #tpu.memory_space<vmem>>, vector<16x1xf32>
    %cst = arith.constant dense<0.000000e+00> : vector<64x8xf32>
    %9 = tpu.matmul %1, %0, %cst {dimension_numbers = #tpu.dot_dimension_numbers<[1], [1], [0], [0], [0, 0, 1, 0], [], []>} : vector<64x32xf32>, vector<8x32xf32>, vector<64x8xf32> -> vector<64x8xf32>
    %10 = vector.broadcast %2 : vector<64x1xf32> to vector<64x8xf32>
    %11 = arith.addf %9, %10 : vector<64x8xf32>
    %cst_17 = arith.constant 0.000000e+00 : f32
    %12 = vector.broadcast %cst_17 : f32 to vector<64x8xf32>
    %13 = arith.maximumf %11, %12 : vector<64x8xf32>
    %cst_18 = arith.constant dense<0.000000e+00> : vector<64x8xf32>
    %14 = tpu.matmul %3, %13, %cst_18 {dimension_numbers = #tpu.dot_dimension_numbers<[1], [0], [0], [1], [0, 0, 1, 1], [], []>} : vector<64x64xf32>, vector<64x8xf32>, vector<64x8xf32> -> vector<64x8xf32>
    %15 = vector.broadcast %4 : vector<64x1xf32> to vector<64x8xf32>
    %16 = arith.addf %14, %15 : vector<64x8xf32>
    %cst_19 = arith.constant 0.000000e+00 : f32
    %17 = vector.broadcast %cst_19 : f32 to vector<64x8xf32>
    %18 = arith.maximumf %16, %17 : vector<64x8xf32>
    %cst_20 = arith.constant dense<0.000000e+00> : vector<32x8xf32>
    %19 = tpu.matmul %5, %18, %cst_20 {dimension_numbers = #tpu.dot_dimension_numbers<[1], [0], [0], [1], [0, 0, 1, 1], [], []>} : vector<32x64xf32>, vector<64x8xf32>, vector<32x8xf32> -> vector<32x8xf32>
    %20 = vector.broadcast %6 : vector<32x1xf32> to vector<32x8xf32>
    %21 = arith.addf %19, %20 : vector<32x8xf32>
    %cst_21 = arith.constant 0.000000e+00 : f32
    %22 = vector.broadcast %cst_21 : f32 to vector<32x8xf32>
    %23 = arith.maximumf %21, %22 : vector<32x8xf32>
    %cst_22 = arith.constant dense<0.000000e+00> : vector<16x8xf32>
    %24 = tpu.matmul %7, %23, %cst_22 {dimension_numbers = #tpu.dot_dimension_numbers<[1], [0], [0], [1], [0, 0, 1, 1], [], []>} : vector<16x32xf32>, vector<32x8xf32>, vector<16x8xf32> -> vector<16x8xf32>
    %25 = vector.broadcast %8 : vector<16x1xf32> to vector<16x8xf32>
    %26 = arith.addf %24, %25 : vector<16x8xf32>
    %cst_23 = arith.constant dense<0xFF800000> : vector<8xf32>
    %27 = vector.multi_reduction <maximumf>, %26, %cst_23 [0] : vector<16x8xf32> to vector<8xf32>
    %28 = vector.shape_cast %27 : vector<8xf32> to vector<1x8xf32>
    %29 = vector.broadcast %28 : vector<1x8xf32> to vector<16x8xf32>
    %30 = arith.subf %26, %29 : vector<16x8xf32>
    %31 = math.exp %30 : vector<16x8xf32>
    %cst_24 = arith.constant dense<0.000000e+00> : vector<8xf32>
    %32 = vector.multi_reduction <add>, %31, %cst_24 [0] : vector<16x8xf32> to vector<8xf32>
    %33 = vector.shape_cast %32 : vector<8xf32> to vector<1x8xf32>
    %34 = math.log %33 : vector<1x8xf32>
    %35 = arith.addf %34, %28 : vector<1x8xf32>
    %36 = vector.broadcast %35 : vector<1x8xf32> to vector<16x8xf32>
    %37 = arith.subf %26, %36 : vector<16x8xf32>
    %c0_25 = arith.constant 0 : index
    %c0_26 = arith.constant 0 : index
    %38 = vector.load %arg10[%c0_25, %c0_26] : memref<16x8xf32, #tpu.memory_space<vmem>>, vector<16x8xf32>
    tpu.vector_store %arg10[%c0_25, %c0_26], %37 {strides = array<i32>} : memref<16x8xf32, #tpu.memory_space<vmem>>, vector<16x8xf32>,
    return
  }
  func.func @transform_0(%arg0: i32) -> (i32, i32) {
    %c0_i32 = arith.constant 0 : i32
    %c0_i32_0 = arith.constant 0 : i32
    return %arg0, %c0_i32 : i32, i32
  }
  func.func @transform_1(%arg0: i32) -> (i32, i32) {
    %c0_i32 = arith.constant 0 : i32
    %c0_i32_0 = arith.constant 0 : i32
    %c0_i32_1 = arith.constant 0 : i32
    return %c0_i32, %c0_i32_0 : i32, i32
  }
  func.func @transform_2(%arg0: i32) -> (i32, i32) {
    %c0_i32 = arith.constant 0 : i32
    %c0_i32_0 = arith.constant 0 : i32
    %c0_i32_1 = arith.constant 0 : i32
    return %c0_i32, %c0_i32_0 : i32, i32
  }
  func.func @transform_3(%arg0: i32) -> (i32, i32) {
    %c0_i32 = arith.constant 0 : i32
    %c0_i32_0 = arith.constant 0 : i32
    %c0_i32_1 = arith.constant 0 : i32
    return %c0_i32, %c0_i32_0 : i32, i32
  }
  func.func @transform_4(%arg0: i32) -> (i32, i32) {
    %c0_i32 = arith.constant 0 : i32
    %c0_i32_0 = arith.constant 0 : i32
    %c0_i32_1 = arith.constant 0 : i32
    return %c0_i32, %c0_i32_0 : i32, i32
  }
  func.func @transform_5(%arg0: i32) -> (i32, i32) {
    %c0_i32 = arith.constant 0 : i32
    %c0_i32_0 = arith.constant 0 : i32
    %c0_i32_1 = arith.constant 0 : i32
    return %c0_i32, %c0_i32_0 : i32, i32
  }
  func.func @transform_6(%arg0: i32) -> (i32, i32) {
    %c0_i32 = arith.constant 0 : i32
    %c0_i32_0 = arith.constant 0 : i32
    %c0_i32_1 = arith.constant 0 : i32
    return %c0_i32, %c0_i32_0 : i32, i32
  }
  func.func @transform_7(%arg0: i32) -> (i32, i32) {
    %c0_i32 = arith.constant 0 : i32
    %c0_i32_0 = arith.constant 0 : i32
    %c0_i32_1 = arith.constant 0 : i32
    return %c0_i32, %c0_i32_0 : i32, i32
  }
  func.func @transform_8(%arg0: i32) -> (i32, i32) {
    %c0_i32 = arith.constant 0 : i32
    %c0_i32_0 = arith.constant 0 : i32
    %c0_i32_1 = arith.constant 0 : i32
    return %c0_i32, %c0_i32_0 : i32, i32
  }
  func.func @transform_9(%arg0: i32) -> (i32, i32) {
    %c0_i32 = arith.constant 0 : i32
    %c0_i32_0 = arith.constant 0 : i32
    return %c0_i32, %arg0 : i32, i32
  }
}

</mosaic_0001>

<bundles_post_ra>
// kernel: tpu_custom_call.1
= control target key start
LH: loop header
LB: loop body
LE: loop exit
PB: predicated region body
PF: predicated region fallthrough
CT: control target
= control target key end

     0   :  { %vm117_vm0 = vcmask 261120   ;;  %v489_v0 = vmov 0   ;;  %vm234_vm1 = vcmask 523264   ;;  %vm412_vm2 = vcmask 64512   ;;  %s710_s2 = inlined_call_operand.vmem [shape: f32[64,1], index: 2, kind: input, shape index: {}]   ;;  %s711_s0 = inlined_call_operand.vmem [shape: f32[8,32], index: 0, kind: input, shape index: {}]   ;;  %s712_s1 = inlined_call_operand.vmem [shape: f32[64,32], index: 1, kind: input, shape index: {}]   ;;  %s713_s4 = inlined_call_operand.vmem [shape: f32[64,1], index: 4, kind: input, shape index: {}]   ;;  %s714_s6 = inlined_call_operand.vmem [shape: f32[32,1], index: 6, kind: input, shape index: {}]   ;;  %s715_s8 = inlined_call_operand.vmem [shape: f32[16,1], index: 8, kind: input, shape index: {}]   ;;  %s716_s3 = inlined_call_operand.vmem [shape: f32[64,64], index: 3, kind: input, shape index: {}]   ;;  %s717_s5 = inlined_call_operand.vmem [shape: f32[32,64], index: 5, kind: input, shape index: {}]   ;;  %s718_s7 = inlined_call_operand.vmem [shape: f32[16,32], index: 7, kind: input, shape index: {}]   ;;  %s719_s9 = inlined_call_operand.vmem [shape: f32[16,8], index: 9, kind: output, shape index: {}]  }
   0x1   :  { %481 = vset.pattern.permute.xlu1 %v489_v0  ;;  %v46_v1 = vld [vmem:[%s710_s2 + $0x28] sm:$0xff]  ;;  %v32_v2 = vld [vmem:[%s711_s0] sm:$0xff]  ;;  %480 = vset.pattern.permute.xlu0 %v489_v0  ;;  %v48_v4 = vld [vmem:[%s710_s2 + $0x38] sm:$0xff] }
   0x2   :  { %104 = vperm.xlu1 %481, %v46_v1   ;;  %448 = vmatpush.xpose.msk.msra.mxu0 %vm117_vm0, %v32_v2  ;;  %v33_v3 = vld [vmem:[%s712_s1] sm:$0xff]  ;;  %v47_v6 = vld [vmem:[%s710_s2 + $0x30] sm:$0xff]  ;;  %v34_v7 = vld [vmem:[%s712_s1 + $0x8] sm:$0xff] }
   0x3   :  { %114 = vperm.xlu0 %480, %v48_v4   ;;  %482 = vset.pattern.permute.xlu2 %v489_v0  ;;  %v45_v5 = vld [vmem:[%s710_s2 + $0x20] sm:$0xff]  ;;  %v44_v8 = vld [vmem:[%s710_s2 + $0x18] sm:$0xff]  ;;  %v42_v10 = vld [vmem:[%s710_s2 + $0x8] sm:$0xff] }
   0x4   :  { %94 = vperm.xlu2 %482, %v44_v8   ;;  %v41_v9 = vld [vmem:[%s710_s2] sm:$0xff]  ;;  %v35_v11 = vld [vmem:[%s712_s1 + $0x10] sm:$0xff]  ;;  %v62_v13 = vld [vmem:[%s713_s4 + $0x28] sm:$0xff] }
   0x5   :  { %449 = vmatmul.msk.f32.vlgmr.msra.gmra.mxu0 %vm117_vm0, %v33_v3  ;;  %v43_v12 = vld [vmem:[%s710_s2 + $0x10] sm:$0xff]  ;;  %v36_v15 = vld [vmem:[%s712_s1 + $0x18] sm:$0xff]  ;;  %v37_v19 = vld [vmem:[%s712_s1 + $0x20] sm:$0xff] }
   0x6   :  { %v63_v14 = vld [vmem:[%s713_s4 + $0x30] sm:$0xff]  ;;  %v64_v16 = vld [vmem:[%s713_s4 + $0x38] sm:$0xff]  ;;  %v61_v20 = vld [vmem:[%s713_s4 + $0x20] sm:$0xff] }
   0x7   :  { %v59_v17 = vld [vmem:[%s713_s4 + $0x10] sm:$0xff]  ;;  %v60_v18 = vld [vmem:[%s713_s4 + $0x18] sm:$0xff]  ;;  %v57_v22 = vld [vmem:[%s713_s4] sm:$0xff] }
   0x8   :  { %v72_v21 = vld [vmem:[%s714_s6 + $0x18] sm:$0xff]  ;;  %v38_v23 = vld [vmem:[%s712_s1 + $0x28] sm:$0xff]  ;;  %v69_v25 = vld [vmem:[%s714_s6] sm:$0xff] }
   0x9   :  { %v58_v24 = vld [vmem:[%s713_s4 + $0x8] sm:$0xff]  ;;  %v39_v27 = vld [vmem:[%s712_s1 + $0x30] sm:$0xff]  ;;  %v40_v30 = vld [vmem:[%s712_s1 + $0x38] sm:$0xff] }
   0xa   :  { %99 = vperm.xlu1 %481, %v45_v5   ;;  %v70_v26 = vld [vmem:[%s714_s6 + $0x8] sm:$0xff]  ;;  %v71_v28 = vld [vmem:[%s714_s6 + $0x10] sm:$0xff]  ;;  %v75_v31 = vld [vmem:[%s715_s8] sm:$0xff] }
   0xb   :  { %109 = vperm.xlu0 %480, %v47_v6   ;;  %v76_v29 = vld [vmem:[%s715_s8 + $0x8] sm:$0xff]  ;;  %v49_v0 = vld [vmem:[%s716_s3] sm:$0xff]  ;;  %v55_v1 = vld [vmem:[%s716_s3 + $0x30] sm:$0xff] }
   0xc   :  { %89 = vperm.xlu2 %482, %v43_v12   ;;  %v50_v2 = vld [vmem:[%s716_s3 + $0x8] sm:$0xff]  ;;  %v56_v3 = vld [vmem:[%s716_s3 + $0x38] sm:$0xff]  ;;  %v51_v4 = vld [vmem:[%s716_s3 + $0x10] sm:$0xff] }
   0xd   :  { %450 = vmatmul.msk.f32.gmra.mxu0 %vm117_vm0, %v34_v7  ;;  %v52_v5 = vld [vmem:[%s716_s3 + $0x18] sm:$0xff]  ;;  %v53_v6 = vld [vmem:[%s716_s3 + $0x20] sm:$0xff]  ;;  %v54_v7 = vld [vmem:[%s716_s3 + $0x28] sm:$0xff] }
  0x12   :  { %79 = vperm.xlu1 %481, %v41_v9  }
  0x13   :  { %84 = vperm.xlu0 %480, %v42_v10  }
  0x14   :  { %231 = vperm.xlu2 %482, %v64_v16  }
  0x15   :  { %451 = vmatmul.msk.f32.gmra.mxu0 %vm117_vm0, %v35_v11 }
  0x1a   :  { %221 = vperm.xlu1 %481, %v62_v13  }
  0x1b   :  { %226 = vperm.xlu0 %480, %v63_v14  }
  0x1c   :  { %216 = vperm.xlu2 %482, %v61_v20  }
  0x1d   :  { %452 = vmatmul.msk.f32.gmra.mxu0 %vm117_vm0, %v36_v15 }
  0x22   :  { %206 = vperm.xlu1 %481, %v59_v17  }
  0x23   :  { %211 = vperm.xlu0 %480, %v60_v18  }
  0x24   :  { %201 = vperm.xlu2 %482, %v58_v24  }
  0x25   :  { %453 = vmatmul.msk.f32.gmra.mxu0 %vm117_vm0, %v37_v19 }
  0x2a   :  { %325 = vperm.xlu1 %481, %v72_v21  }
  0x2b   :  { %196 = vperm.xlu0 %480, %v57_v22  }
  0x2c   :  { %320 = vperm.xlu2 %482, %v71_v28  }
  0x2d   :  { %454 = vmatmul.msk.f32.gmra.mxu0 %vm117_vm0, %v38_v23 }
  0x32   :  { %310 = vperm.xlu1 %481, %v69_v25  }
  0x33   :  { %315 = vperm.xlu0 %480, %v70_v26  }
  0x34   :  { %375 = vperm.xlu2 %482, %v75_v31  }
  0x35   :  { %455 = vmatmul.msk.f32.gmra.mxu0 %vm117_vm0, %v39_v27 }
  0x3b   :  { %380 = vperm.xlu0 %480, %v76_v29  }
  0x3d   :  { %456 = vmatmul.msk.f32.gmra.mxu0 %vm117_vm0, %v40_v30 }
  0x5e   :  { %v95_v41 = vpop.permute.xlu2 %94 }
  0x66   :  { %v90_v51 = vpop.permute.xlu2 %89 }
  0x6e   :  { %v232_v11 = vpop.permute.xlu2 %231 }
  0x74   :  { %v105_v39 = vpop.permute.xlu1 %104 }
  0x75   :  { %v115_v38 = vpop.permute.xlu0 %114 }
  0x76   :  { %v217_v22 = vpop.permute.xlu2 %216 }
  0x7c   :  { %v100_v43 = vpop.permute.xlu1 %99 }
  0x7d   :  { %v110_v42 = vpop.permute.xlu0 %109 }
  0x82   :  { %v162_v32 = vpop.f32.mrf.mxu0 }
  0x84   :  { %v80_v57 = vpop.permute.xlu1 %79 }
  0x85   :  { %v85_v54 = vpop.permute.xlu0 %84  ;;  %v163_v60 = vadd.f32 %v162_v32, %v80_v57  ;;  %v202_v32 = vpop.permute.xlu2 %201 }
  0x87   :  { %v186_v63 = vmax.f32 %v163_v60, 0.0  ;;  %v73_v60 = vld [vmem:[%s718_s7] sm:$0xff] }
  0x8a   :  { %v165_v33 = vpop.f32.mrf.mxu0 }
  0x8b   :  { %v166_v58 = vadd.f32 %v165_v33, %v85_v54 }
  0x8c   :  { %v222_v21 = vpop.permute.xlu1 %221 }
  0x8d   :  { %v187_v62 = vmax.f32 %v166_v58, 0.0  ;;  %v227_v12 = vpop.permute.xlu0 %226 }
  0x92   :  { %v168_v34 = vpop.f32.mrf.mxu0 }
  0x93   :  { %v169_v55 = vadd.f32 %v168_v34, %v90_v51 }
  0x94   :  { %v207_v29 = vpop.permute.xlu1 %206 }
  0x95   :  { %v188_v61 = vmax.f32 %v169_v55, 0.0  ;;  %v212_v23 = vpop.permute.xlu0 %211 }
  0x9a   :  { %v171_v35 = vpop.f32.mrf.mxu0 }
  0x9b   :  { %v172_v52 = vadd.f32 %v171_v35, %v95_v41  ;;  %v66_v41 = vld [vmem:[%s717_s5 + $0x8] sm:$0xff] }
  0x9d   :  { %v189_v59 = vmax.f32 %v172_v52, 0.0  ;;  %v197_v35 = vpop.permute.xlu0 %196 }
  0xa2   :  { %v174_v36 = vpop.f32.mrf.mxu0 }
  0xa3   :  { %v175_v49 = vadd.f32 %v174_v36, %v100_v43  ;;  %v68_v43 = vld [vmem:[%s717_s5 + $0x18] sm:$0xff] }
  0xa5   :  { %v190_v56 = vmax.f32 %v175_v49, 0.0  ;;  %v316_v52 = vpop.permute.xlu0 %315 }
  0xaa   :  { %v177_v37 = vpop.f32.mrf.mxu0 }
  0xab   :  { %v178_v47 = vadd.f32 %v177_v37, %v105_v39 }
  0xad   :  { %v191_v53 = vmax.f32 %v178_v47, 0.0  ;;  %v326_v47 = vpop.permute.xlu1 %325 }
  0xb2   :  { %v180_v40 = vpop.f32.mrf.mxu0 }
  0xb3   :  { %v181_v45 = vadd.f32 %v180_v40, %v110_v42  ;;  %v65_v40 = vld [vmem:[%s717_s5] sm:$0xff]  ;;  %v67_v42 = vld [vmem:[%s717_s5 + $0x10] sm:$0xff] }
  0xb5   :  { %v192_v50 = vmax.f32 %v181_v45, 0.0  ;;  %v311_v55 = vpop.permute.xlu1 %310 }
  0xba   :  { %v183_v44 = vpop.f32.mrf.mxu0 }
  0xbb   :  { %v184_v46 = vadd.f32 %v183_v44, %v115_v38 }
  0xbd   :  { %v193_v48 = vmax.f32 %v184_v46, 0.0 }
  0xbf   :  { %267 = vmatpush.msra.mxu1 %v193_v48  ;;  %471 = vmatpush.msra.mxu3 %v193_v48  ;;  %v321_v48 = vpop.permute.xlu2 %320 }
  0xc1   :  { %268 = vmatpush.msra.mxu1 %v192_v50  ;;  %472 = vmatpush.msra.mxu3 %v192_v50 }
  0xc3   :  { %269 = vmatpush.msra.mxu1 %v191_v53  ;;  %473 = vmatpush.msra.mxu3 %v191_v53 }
  0xc5   :  { %270 = vmatpush.msra.mxu1 %v190_v56  ;;  %474 = vmatpush.msra.mxu3 %v190_v56 }
  0xc7   :  { %271 = vmatpush.msra.mxu1 %v189_v59  ;;  %475 = vmatpush.msra.mxu3 %v189_v59 }
  0xc9   :  { %272 = vmatpush.msra.mxu1 %v188_v61  ;;  %476 = vmatpush.msra.mxu3 %v188_v61  ;;  %v74_v61 = vld [vmem:[%s718_s7 + $0x8] sm:$0xff] }
  0xcb   :  { %273 = vmatpush.msra.mxu1 %v187_v62  ;;  %477 = vmatpush.msra.mxu3 %v187_v62 }
  0xcd   :  { %274 = vmatpush.msra.mxu1 %v186_v63  ;;  %478 = vmatpush.msra.mxu3 %v186_v63  ;;  %v376_v63 = vpop.permute.xlu2 %375 }
  0xce   :  { %457 = vmatmul.msk.f32.vlgmr.msra.gmra.mxu1 %vm234_vm1, %v49_v0  ;;  %463 = vmatmul.msk.f32.vlgmr.msra.gmra.mxu3 %vm234_vm1, %v55_v1  ;;  %v381_v1 = vpop.permute.xlu0 %380 }
  0xd6   :  { %458 = vmatmul.msk.f32.gmra.mxu1 %vm234_vm1, %v50_v2  ;;  %464 = vmatmul.msk.f32.gmra.mxu3 %vm234_vm1, %v56_v3 }
  0xde   :  { %459 = vmatmul.msk.f32.gmra.mxu1 %vm234_vm1, %v51_v4 }
  0xe6   :  { %460 = vmatmul.msk.f32.gmra.mxu1 %vm234_vm1, %v52_v5 }
  0xee   :  { %461 = vmatmul.msk.f32.gmra.mxu1 %vm234_vm1, %v53_v6 }
  0xf6   :  { %462 = vmatmul.msk.f32.gmra.mxu1 %vm234_vm1, %v54_v7 }
 0x14b   :  { %v276_v8 = vpop.f32.mrf.mxu1 }
 0x14c   :  { %v277_v36 = vadd.f32 %v276_v8, %v197_v35 }
 0x14e   :  { %v300_v39 = vmax.f32 %v277_v36, 0.0 }
 0x151   :  { %v294_v9 = vpop.f32.mrf.mxu3 }
 0x152   :  { %v295_v14 = vadd.f32 %v294_v9, %v227_v12 }
 0x153   :  { %v279_v10 = vpop.f32.mrf.mxu1 }
 0x154   :  { %v306_v18 = vmax.f32 %v295_v14, 0.0  ;;  %v280_v33 = vadd.f32 %v279_v10, %v202_v32 }
 0x156   :  { %v301_v38 = vmax.f32 %v280_v33, 0.0 }
 0x159   :  { %v297_v13 = vpop.f32.mrf.mxu3 }
 0x15a   :  { %v298_v15 = vadd.f32 %v297_v13, %v232_v11 }
 0x15b   :  { %v282_v16 = vpop.f32.mrf.mxu1 }
 0x15c   :  { %v307_v17 = vmax.f32 %v298_v15, 0.0  ;;  %v283_v30 = vadd.f32 %v282_v16, %v207_v29 }
 0x15e   :  { %348 = vmatpush.msra.mxu2 %v307_v17  ;;  %v302_v37 = vmax.f32 %v283_v30, 0.0 }
 0x160   :  { %349 = vmatpush.msra.mxu2 %v306_v18 }
 0x163   :  { %v285_v19 = vpop.f32.mrf.mxu1 }
 0x164   :  { %v286_v27 = vadd.f32 %v285_v19, %v212_v23 }
 0x166   :  { %v303_v34 = vmax.f32 %v286_v27, 0.0 }
 0x16b   :  { %v288_v20 = vpop.f32.mrf.mxu1 }
 0x16c   :  { %v289_v25 = vadd.f32 %v288_v20, %v217_v22 }
 0x16e   :  { %v304_v31 = vmax.f32 %v289_v25, 0.0 }
 0x173   :  { %v291_v24 = vpop.f32.mrf.mxu1 }
 0x174   :  { %v292_v26 = vadd.f32 %v291_v24, %v222_v21 }
 0x176   :  { %v305_v28 = vmax.f32 %v292_v26, 0.0 }
 0x178   :  { %350 = vmatpush.msra.mxu2 %v305_v28 }
 0x17a   :  { %351 = vmatpush.msra.mxu2 %v304_v31 }
 0x17c   :  { %352 = vmatpush.msra.mxu2 %v303_v34 }
 0x17e   :  { %353 = vmatpush.msra.mxu2 %v302_v37 }
 0x180   :  { %354 = vmatpush.msra.mxu2 %v301_v38 }
 0x182   :  { %355 = vmatpush.msra.mxu2 %v300_v39 }
 0x183   :  { %465 = vmatmul.msk.f32.vlgmr.msra.gmra.mxu2 %vm234_vm1, %v65_v40 }
 0x18b   :  { %466 = vmatmul.msk.f32.gmra.mxu2 %vm234_vm1, %v66_v41 }
 0x193   :  { %467 = vmatmul.msk.f32.gmra.mxu2 %vm234_vm1, %v67_v42 }
 0x19b   :  { %468 = vmatmul.msk.f32.gmra.mxu2 %vm234_vm1, %v68_v43 }
 0x206   :  { %v357_v44 = vpop.f32.mrf.mxu2 }
 0x207   :  { %v358_v56 = vadd.f32 %v357_v44, %v311_v55 }
 0x209   :  { %v369_v59 = vmax.f32 %v358_v56, 0.0 }
 0x20e   :  { %v360_v45 = vpop.f32.mrf.mxu2 }
 0x20f   :  { %v361_v53 = vadd.f32 %v360_v45, %v316_v52 }
 0x211   :  { %v370_v58 = vmax.f32 %v361_v53, 0.0 }
 0x216   :  { %v363_v46 = vpop.f32.mrf.mxu2 }
 0x217   :  { %v364_v50 = vadd.f32 %v363_v46, %v321_v48 }
 0x219   :  { %v371_v57 = vmax.f32 %v364_v50, 0.0 }
 0x21e   :  { %v366_v49 = vpop.f32.mrf.mxu2 }
 0x21f   :  { %v367_v51 = vadd.f32 %v366_v49, %v326_v47 }
 0x221   :  { %v372_v54 = vmax.f32 %v367_v51, 0.0 }
 0x223   :  { %401 = vmatpush.msrb.mxu3 %v372_v54 }
 0x225   :  { %402 = vmatpush.msrb.mxu3 %v371_v57 }
 0x227   :  { %403 = vmatpush.msrb.mxu3 %v370_v58 }
 0x229   :  { %404 = vmatpush.msrb.mxu3 %v369_v59 }
 0x22a   :  { %469 = vmatmul.msk.f32.vlgmr.msrb.gmra.mxu3 %vm117_vm0, %v73_v60 }
 0x232   :  { %470 = vmatmul.msk.f32.gmra.mxu3 %vm117_vm0, %v74_v61 }
 0x2ad   :  { %v406_v62 = vpop.f32.mrf.mxu3 }
 0x2ae   :  { %v407_v0 = vadd.f32 %v406_v62, %v376_v63 }
 0x2b0   :  { %v413_v4 = vsel %vm412_vm2, %v407_v0, -inf }
 0x2b5   :  { %v409_v2 = vpop.f32.mrf.mxu3 }
 0x2b6   :  { %v410_v3 = vadd.f32 %v409_v2, %v381_v1 }
 0x2b8   :  { %v414_v5 = vsel %vm412_vm2, %v410_v3, -inf }
 0x2b9   :  { %v415_v6 = vmax.f32 %v413_v4, %v414_v5 }
 0x2bb   :  { %v416_v7 = vrot.slane %v415_v6, 4 }
 0x2bd   :  { %v417_v8 = vmax.f32 %v415_v6, %v416_v7 }
 0x2bf   :  { %v418_v9 = vrot.slane %v417_v8, 2 }
 0x2c1   :  { %v419_v10 = vmax.f32 %v417_v8, %v418_v9 }
 0x2c3   :  { %v420_v11 = vrot.slane %v419_v10, 1 }
 0x2c5   :  { %v421_v12 = vmax.f32 %v419_v10, %v420_v11 }
 0x2c7   :  { %v422_v13 = vsub.f32 %v407_v0, %v421_v12  ;;  %v423_v14 = vsub.f32 %v410_v3, %v421_v12 }
 0x2c9   :  { %v424_v15 = vmul.f32 1.442695, %v422_v13  ;;  %v426_v16 = vmul.f32 1.442695, %v423_v14 }
 0x2cb   :  { %483 = vpow2.f32 %v424_v15 }
 0x2cc   :  { %485 = vpow2.f32 %v426_v16 }
 0x2d1   :  { %v484_v17 = vpop.eup %483 }
 0x2d2   :  { %v486_v18 = vpop.eup %485  ;;  %v428_v19 = vsel %vm412_vm2, %v484_v17, 0.0 }
 0x2d3   :  { %v429_v20 = vsel %vm412_vm2, %v486_v18, 0.0 }
 0x2d4   :  { %v430_v21 = vadd.f32 %v429_v20, %v428_v19 }
 0x2d6   :  { %v431_v22 = vrot.slane %v430_v21, 4 }
 0x2d8   :  { %v432_v23 = vadd.f32 %v431_v22, %v430_v21 }
 0x2da   :  { %v433_v24 = vrot.slane %v432_v23, 2 }
 0x2dc   :  { %v434_v25 = vadd.f32 %v433_v24, %v432_v23 }
 0x2de   :  { %v435_v26 = vrot.slane %v434_v25, 1 }
 0x2e0   :  { %v436_v27 = vadd.f32 %v435_v26, %v434_v25 }
 0x2e2   :  { %487 = vlog2.f32 %v436_v27 }
 0x2e8   :  { %v488_v28 = vpop.eup %487 }
 0x2e9   :  { %v438_v29 = vmul.f32 0.6931472, %v488_v28 }
 0x2eb   :  { %v439_v30 = vadd.f32 %v438_v29, %v421_v12 }
 0x2ed   :  { %v440_v31 = vsub.f32 %v407_v0, %v439_v30  ;;  %v441_v32 = vsub.f32 %v410_v3, %v439_v30 }
 0x2ef   :  { %442 = vst.msk [vmem:[%s719_s9] sm:$0xff] %vm412_vm2, %v440_v31 }
 0x2f0   :  { %443 = vst.msk [vmem:[%s719_s9 + $0x8] sm:$0xff] %vm412_vm2, %v441_v32 }

</bundles_post_ra>
